<compile_context>
chip_gen: v5e
topology: v5e:2x2
jax: 0.10.0
libtpu: 0.0.40
codegen_flags: <defaults>
</compile_context>

<pallas_src>
import jax
import jax.numpy as jnp
import numpy as np
from jax.experimental import pallas as pl
from jax.experimental.pallas import tpu as pltpu


def grn_kernel(row_ref, col_ref, hp_ref,
               we1r_ref, be1_ref, we2_ref, be2_ref,
               wc1_ref, bc1_ref, wc2_ref,
               out_ref):
    f32 = jnp.float32
    bf16 = jnp.bfloat16

    TE = row_ref.shape[0]
    N = hp_ref.shape[0]
    H = we2_ref.shape[0]
    L = out_ref.shape[1]          # lane-padded accumulator width (>= H + 4)

    j = pl.program_id(1)          # reduction (edge-tile) axis within this split

    @pl.when(j == 0)
    def _init():
        out_ref[...] = jnp.zeros_like(out_ref)

    # --- per-tile one-hots (padded edges have row/col == -1 -> all-zero rows) ---
    row = row_ref[...]                                           # (TE, 1) int32
    col = col_ref[...]                                           # (TE, 1) int32
    node_iota = jax.lax.broadcasted_iota(jnp.int32, (TE, N), 1)
    oh_row = (node_iota == row).astype(bf16)                     # (TE, N)
    oh_col = (node_iota == col).astype(bf16)                     # (TE, N)

    # --- fused gather of the pre-packed bf16 operand [h@We_s | h@We_t | coord | vel] ---
    packed = hp_ref[...]                                         # (N, P) bf16
    g_row = jnp.dot(oh_row, packed, preferred_element_type=f32)  # (TE, P)
    g_col = jnp.dot(oh_col, packed, preferred_element_type=f32)  # (TE, P)

    hs_row = g_row[:, :H]                                        # (h @ We_src)[row]
    ht_col = g_col[:, H:2 * H]                                   # (h @ We_tgt)[col]
    coord_diff = g_row[:, 2 * H:2 * H + 3] - g_col[:, 2 * H:2 * H + 3]   # (TE, 3)
    vel_diff = g_row[:, 2 * H + 3:2 * H + 6] - g_col[:, 2 * H + 3:2 * H + 6]

    # --- coord2radial (norm_vel=True, norm_diff=False); rsqrt on the EUP slot ---
    sx2 = jnp.sum(coord_diff * coord_diff, axis=1, keepdims=True)   # (TE, 1)
    sv2 = jnp.sum(vel_diff * vel_diff, axis=1, keepdims=True)
    dxv = jnp.sum(coord_diff * vel_diff, axis=1, keepdims=True)
    f_x = jnp.sqrt(sx2)
    f_v = jnp.sqrt(sv2)
    # separate rsqrt's avoid overflow/underflow of sx2*sv2; eps guards padded edges
    f_xv = dxv * (jax.lax.rsqrt(jnp.maximum(sx2, 1e-30)) *
                  jax.lax.rsqrt(jnp.maximum(sv2, 1e-30)))

    # --- edge MLP; radial contribution as three broadcast VPU FMAs (no K=3 MXU pass) ---
    e_pre = (hs_row + ht_col
             + f_x * we1r_ref[0:1, :]
             + f_v * we1r_ref[1:2, :]
             + f_xv * we1r_ref[2:3, :]
             + be1_ref[...])
    e_hid = jnp.maximum(e_pre, 0.0)
    edge_feat = jnp.maximum(
        jnp.dot(e_hid, we2_ref[...], preferred_element_type=f32) + be2_ref[...], 0.0)

    # --- coord MLP; final (H -> 1) layer on the VPU (no 1-lane MXU output) ---
    c_hid = jnp.maximum(
        jnp.dot(edge_feat, wc1_ref[...], preferred_element_type=f32) + bc1_ref[...], 0.0)
    c_scalar = jnp.sum(c_hid * wc2_ref[...], axis=1, keepdims=True)  # (TE, 1)
    trans = jnp.clip(coord_diff * c_scalar, -100.0, 100.0)           # (TE, 3)

    # --- fused scatter, lane-padded to L=128 for unmasked accumulator stores ---
    pieces = [edge_feat, trans, jnp.ones((TE, 1), f32)]
    if L > H + 4:
        pieces.append(jnp.zeros((TE, L - H - 4), f32))
    scatter_rhs = jnp.concatenate(pieces, axis=1).astype(bf16)       # (TE, L)
    seg = jax.lax.dot_general(
        oh_row, scatter_rhs,
        dimension_numbers=(((0,), (0,)), ((), ())),   # contract edge axis -> (N, L)
        preferred_element_type=f32)
    out_ref[...] += seg


def grn_forward(h, edge_index, coord, vel, params, *,
                edge_tile=256, edge_splits=1, vmem_budget_bytes=24 << 20):
    row, col = edge_index
    E = row.shape[0]
    N, F = h.shape
    H = params["we2"].shape[0]
    Fout = params["wn2"].shape[1]
    # TODO(synk): for 2H+6 > 128 fall back to a single lane-concat [h_row|h_col] K=2F matmul.
    assert 2 * H + 6 <= 128, "pre-projected packing requires 2*hidden+6 <= 128 lanes"
    assert edge_tile % 8 == 0

    P = 128 * pl.cdiv(2 * H + 6, 128)   # packed-operand lane width
    L = 128 * pl.cdiv(H + 4, 128)       # accumulator lane width

    we1 = params["we1"]
    we1_s, we1_t, we1_r = we1[:F], we1[F:2 * F], we1[2 * F:]
    wn1 = params["wn1"]
    wn1_h, wn1_a = wn1[:F], wn1[F:]
    wc2_row = params["wc2"].reshape(1, H)

    # pre-projected, lane-padded, bf16-packed node operand (cast ONCE here)
    hp = jnp.zeros((N, P), jnp.float32)
    hp = hp.at[:, :H].set(h @ we1_s)
    hp = hp.at[:, H:2 * H].set(h @ we1_t)
    hp = hp.at[:, 2 * H:2 * H + 3].set(coord)
    hp = hp.at[:, 2 * H + 3:2 * H + 6].set(vel)
    hp = hp.astype(jnp.bfloat16)

    # --- VMEM budget heuristic: shrink the edge tile until the estimate fits ---
    def vmem_estimate(te):
        onehots = 2 * te * N * 2                 # bf16 one-hots
        gathers = 2 * te * P * 4                 # f32 gather outputs
        scat = te * L * (2 + 4)                  # bf16 rhs + f32 seg
        mlp = 6 * te * H * 4                     # edge/coord MLP intermediates
        hp_buf = 2 * N * P * 2                   # double-buffered packed operand
        out_buf = 2 * N * L * 4                  # resident accumulator block
        idx = 2 * 2 * te * 4                     # row/col tiles
        w = (3 * H * H + 8 * H) * 4              # weights
        return onehots + gathers + scat + mlp + hp_buf + out_buf + idx + w

    while edge_tile > 64 and vmem_estimate(edge_tile) > vmem_budget_bytes:
        edge_tile //= 2
    vmem_limit = int(min(max(2 * vmem_estimate(edge_tile), 16 << 20), 48 << 20))

    tiles_per_split = max(pl.cdiv(pl.cdiv(E, edge_splits), edge_tile), 1)
    E_pad = edge_splits * tiles_per_split * edge_tile
    pad = E_pad - E
    row_p = jnp.pad(row.astype(jnp.int32), (0, pad), constant_values=-1).reshape(E_pad, 1)
    col_p = jnp.pad(col.astype(jnp.int32), (0, pad), constant_values=-1).reshape(E_pad, 1)

    tail_args = (hp, we1_r, params["be1"], params["we2"], params["be2"],
                 params["wc1"], params["bc1"], wc2_row)

    edge_spec = pl.BlockSpec((edge_tile, 1),
                             lambda s, j: (s * tiles_per_split + j, 0))

    def full_spec(a):
        nd = a.ndim
        return pl.BlockSpec(a.shape, lambda s, j, _nd=nd: (0,) * _nd)

    grid_spec = pltpu.PrefetchScalarGridSpec(
        num_scalar_prefetch=0,
        grid=(edge_splits, tiles_per_split),
        in_specs=[edge_spec, edge_spec] + [full_spec(a) for a in tail_args],
        # one lane-dense (N, L) f32 partial accumulator per split (parallel axis)
        out_specs=pl.BlockSpec((None, N, L), lambda s, j: (s, 0, 0)),
    )

    partials = pl.pallas_call(
        grn_kernel,
        out_shape=jax.ShapeDtypeStruct((edge_splits, N, L), jnp.float32),
        grid_spec=grid_spec,
        compiler_params=pltpu.CompilerParams(
            dimension_semantics=("parallel", "arbitrary"),
            vmem_limit_bytes=vmem_limit),
    )(row_p, col_p, *tail_args)

    # --- tiny XLA epilogue: combine per-split partials, coord mean, node MLP (f32) ---
    acc = jnp.sum(partials, axis=0)                       # (N, L)
    agg = acc[:, :H]                                      # segment_sum(edge_feat)
    seg_trans = acc[:, H:H + 3]                           # segment_sum(trans)
    counts = acc[:, H + 3:H + 4]                          # per-node degree
    coord_out = seg_trans / jnp.maximum(counts, 1.0)      # unsorted_segment_mean; coords_weight=1.0

    n_pre = h @ wn1_h + agg @ wn1_a + params["bn1"]
    h_out = jax.nn.relu(n_pre) @ params["wn2"] + params["bn2"]

    # forward returns (h, coord, edge_attr); edge_attr passthrough is None here.
    return h_out, coord_out, None


def grn_reference(h, edge_index, coord, vel, params):
    """Pure-JAX f32 reference mirroring the PyTorch forward."""
    row, col = edge_index
    coord_diff = coord[row] - coord[col]
    vel_diff = vel[row] - vel[col]
    f_x = jnp.sqrt(jnp.sum(coord_diff ** 2, 1, keepdims=True))
    f_v = jnp.sqrt(jnp.sum(vel_diff ** 2, 1, keepdims=True))
    f_xv = jnp.sum((coord_diff / f_x) * (vel_diff / f_v), 1, keepdims=True)
    radial = jnp.concatenate([f_x, f_v, f_xv], 1)

    edge_in = jnp.concatenate([h[row], h[col], radial], 1)
    e_hid = jax.nn.relu(edge_in @ params["we1"] + params["be1"])
    edge_feat = jax.nn.relu(e_hid @ params["we2"] + params["be2"])

    c_hid = jax.nn.relu(edge_feat @ params["wc1"] + params["bc1"])
    trans = jnp.clip(coord_diff * (c_hid @ params["wc2"]), -100.0, 100.0)
    N = h.shape[0]
    seg_sum = jnp.zeros((N, 3)).at[row].add(trans)
    counts = jnp.zeros((N, 1)).at[row].add(1.0)
    coord_out = seg_sum / jnp.maximum(counts, 1.0)

    agg = jnp.zeros((N, edge_feat.shape[1])).at[row].add(edge_feat)
    node_in = jnp.concatenate([h, agg], 1)
    n_hid = jax.nn.relu(node_in @ params["wn1"] + params["bn1"])
    h_out = n_hid @ params["wn2"] + params["bn2"]
    return h_out, coord_out


def make_params(key, input_nf, output_nf, hidden_nf):
    ks = jax.random.split(key, 11)

    def lin_w(k, fan_in, fan_out, scale=None):
        s = scale if scale is not None else 1.0 / np.sqrt(fan_in)
        return jax.random.uniform(k, (fan_in, fan_out), jnp.float32, -s, s)

    def lin_b(k, fan_in, fan_out):
        s = 1.0 / np.sqrt(fan_in)
        return jax.random.uniform(k, (1, fan_out), jnp.float32, -s, s)

    in_edge = 2 * input_nf + 3
    return {
        "we1": lin_w(ks[0], in_edge, hidden_nf),
        "be1": lin_b(ks[1], in_edge, hidden_nf),
        "we2": lin_w(ks[2], hidden_nf, hidden_nf),
        "be2": lin_b(ks[3], hidden_nf, hidden_nf),
        "wc1": lin_w(ks[4], hidden_nf, hidden_nf),
        "bc1": lin_b(ks[5], hidden_nf, hidden_nf),
        # xavier_uniform with gain=0.001, no bias
        "wc2": lin_w(ks[6], hidden_nf, 1,
                     scale=0.001 * np.sqrt(6.0 / (hidden_nf + 1))),
        "wn1": lin_w(ks[7], hidden_nf + input_nf, hidden_nf),
        "bn1": lin_b(ks[8], hidden_nf + input_nf, hidden_nf),
        "wn2": lin_w(ks[9], hidden_nf, output_nf),
        "bn2": lin_b(ks[10], hidden_nf, output_nf),
    }


if __name__ == "__main__":
    N, input_nf, output_nf, hidden_nf = 8, 8, 8, 32

    key = jax.random.PRNGKey(0)
    k_h, k_c, k_v, k_p = jax.random.split(key, 4)
    h = jax.random.normal(k_h, (N, input_nf), jnp.float32)
    coord = jax.random.normal(k_c, (N, 3), jnp.float32)
    vel = jax.random.normal(k_v, (N, 3), jnp.float32)

    # fully-connected graph without self-loops (standard EGNN edge set): E = 56
    rows, cols = [], []
    for a in range(N):
        for b in range(N):
            if a != b:
                rows.append(a)
                cols.append(b)
    row = jnp.asarray(rows, jnp.int32)
    col = jnp.asarray(cols, jnp.int32)
    edge_index = (row, col)

    params = make_params(k_p, input_nf, output_nf, hidden_nf)
    h_ref, coord_ref = grn_reference(h, edge_index, coord, vel, params)

    # Run 1: small tiles + 2-way edge split (exercises the accumulate path and the
    # parallel-split / partial-combine epilogue used for the v7x 2-TC sharding).
    h_out, coord_out, _ = grn_forward(h, edge_index, coord, vel, params,
                                      edge_tile=16, edge_splits=2)
    jax.block_until_ready((h_out, coord_out))
    np.testing.assert_allclose(np.asarray(h_out), np.asarray(h_ref), rtol=2e-2, atol=2e-2)
    np.testing.assert_allclose(np.asarray(coord_out), np.asarray(coord_ref), rtol=2e-2, atol=2e-2)

    # Run 2: default config (edge_tile=256, single split).
    h_out2, coord_out2, _ = grn_forward(h, edge_index, coord, vel, params)
    jax.block_until_ready((h_out2, coord_out2))
    np.testing.assert_allclose(np.asarray(h_out2), np.asarray(h_ref), rtol=2e-2, atol=2e-2)
    np.testing.assert_allclose(np.asarray(coord_out2), np.asarray(coord_ref), rtol=2e-2, atol=2e-2)

    print("KERNEL_OK")
</pallas_src>

<mosaic_0001>
module attributes {stable_mosaic.version = 11 : i64} {
  func.func @grn_kernel(%arg0: i32, %arg1: i32, %arg2: memref<16x1xi32, #tpu.memory_space<vmem>>, %arg3: memref<16x1xi32, #tpu.memory_space<vmem>>, %arg4: memref<8x128xbf16, #tpu.memory_space<vmem>>, %arg5: memref<3x32xf32, #tpu.memory_space<vmem>>, %arg6: memref<1x32xf32, #tpu.memory_space<vmem>>, %arg7: memref<32x32xf32, #tpu.memory_space<vmem>>, %arg8: memref<1x32xf32, #tpu.memory_space<vmem>>, %arg9: memref<32x32xf32, #tpu.memory_space<vmem>>, %arg10: memref<1x32xf32, #tpu.memory_space<vmem>>, %arg11: memref<1x32xf32, #tpu.memory_space<vmem>>, %arg12: memref<1x8x128xf32, #tpu.memory_space<vmem>>) attributes {dimension_semantics = [#tpu.dimension_semantics<parallel>, #tpu.dimension_semantics<arbitrary>], iteration_bounds = array<i64: 2, 2>, scalar_prefetch = 0 : i64, scratch_operands = 0 : i64, tpu.core_type = #tpu.core_type<tc>, window_params = [{transform_indices = @transform_0, window_bounds = array<i64: 16, 1>}, {transform_indices = @transform_1, window_bounds = array<i64: 16, 1>}, {pipeline_mode = #tpu.pipeline_mode<synchronous>, transform_indices = @transform_2, window_bounds = array<i64: 8, 128>}, {pipeline_mode = #tpu.pipeline_mode<synchronous>, transform_indices = @transform_3, window_bounds = array<i64: 3, 32>}, {pipeline_mode = #tpu.pipeline_mode<synchronous>, transform_indices = @transform_4, window_bounds = array<i64: 1, 32>}, {pipeline_mode = #tpu.pipeline_mode<synchronous>, transform_indices = @transform_5, window_bounds = array<i64: 32, 32>}, {pipeline_mode = #tpu.pipeline_mode<synchronous>, transform_indices = @transform_6, window_bounds = array<i64: 1, 32>}, {pipeline_mode = #tpu.pipeline_mode<synchronous>, transform_indices = @transform_7, window_bounds = array<i64: 32, 32>}, {pipeline_mode = #tpu.pipeline_mode<synchronous>, transform_indices = @transform_8, window_bounds = array<i64: 1, 32>}, {pipeline_mode = #tpu.pipeline_mode<synchronous>, transform_indices = @transform_9, window_bounds = array<i64: 1, 32>}, {transform_indices = @transform_10, window_bounds = array<i64: 1, 8, 128>}]} {
    %c0_i32 = arith.constant 0 : i32
    %0 = arith.cmpi eq, %arg1, %c0_i32 : i32
    %1 = arith.extui %0 : i1 to i32
    %c0_i32_0 = arith.constant 0 : i32
    %2 = arith.cmpi ne, %1, %c0_i32_0 : i32
    scf.if %2 {
      %cst_45 = arith.constant 0.000000e+00 : f32
      %103 = vector.broadcast %cst_45 : f32 to vector<8x128xf32>
      %c0_46 = arith.constant 0 : index
      %c0_47 = arith.constant 0 : index
      %c0_48 = arith.constant 0 : index
      %104 = vector.load %arg12[%c0_46, %c0_47, %c0_48] : memref<1x8x128xf32, #tpu.memory_space<vmem>>, vector<1x8x128xf32>
      %105 = vector.shape_cast %104 : vector<1x8x128xf32> to vector<8x128xf32>
      %106 = vector.shape_cast %103 : vector<8x128xf32> to vector<1x8x128xf32>
      tpu.vector_store %arg12[%c0_46, %c0_47, %c0_48], %106 {strides = array<i32>} : memref<1x8x128xf32, #tpu.memory_space<vmem>>, vector<1x8x128xf32>,
    } else {
    }
    %c0 = arith.constant 0 : index
    %c0_1 = arith.constant 0 : index
    %3 = vector.load %arg2[%c0, %c0_1] : memref<16x1xi32, #tpu.memory_space<vmem>>, vector<16x1xi32>
    %c0_2 = arith.constant 0 : index
    %c0_3 = arith.constant 0 : index
    %4 = vector.load %arg3[%c0_2, %c0_3] : memref<16x1xi32, #tpu.memory_space<vmem>>, vector<16x1xi32>
    %5 = tpu.iota {dimensions = array<i32: 1>} : vector<16x8xi32>
    %6 = vector.broadcast %3 : vector<16x1xi32> to vector<16x8xi32>
    %7 = arith.cmpi eq, %5, %6 : vector<16x8xi32>
    %8 = arith.extui %7 : vector<16x8xi1> to vector<16x8xi32>
    %9 = arith.sitofp %8 : vector<16x8xi32> to vector<16x8xf32>
    %10 = arith.truncf %9 : vector<16x8xf32> to vector<16x8xbf16>
    %11 = vector.broadcast %4 : vector<16x1xi32> to vector<16x8xi32>
    %12 = arith.cmpi eq, %5, %11 : vector<16x8xi32>
    %13 = arith.extui %12 : vector<16x8xi1> to vector<16x8xi32>
    %14 = arith.sitofp %13 : vector<16x8xi32> to vector<16x8xf32>
    %15 = arith.truncf %14 : vector<16x8xf32> to vector<16x8xbf16>
    %c0_4 = arith.constant 0 : index
    %c0_5 = arith.constant 0 : index
    %16 = vector.load %arg4[%c0_4, %c0_5] : memref<8x128xbf16, #tpu.memory_space<vmem>>, vector<8x128xbf16>
    %cst = arith.constant dense<0.000000e+00> : vector<16x128xf32>
    %17 = tpu.matmul %10, %16, %cst {dimension_numbers = #tpu.dot_dimension_numbers<[1], [0], [0], [1], [0, 0, 1, 1], [], []>} : vector<16x8xbf16>, vector<8x128xbf16>, vector<16x128xf32> -> vector<16x128xf32>
    %cst_6 = arith.constant dense<0.000000e+00> : vector<16x128xf32>
    %18 = tpu.matmul %15, %16, %cst_6 {dimension_numbers = #tpu.dot_dimension_numbers<[1], [0], [0], [1], [0, 0, 1, 1], [], []>} : vector<16x8xbf16>, vector<8x128xbf16>, vector<16x128xf32> -> vector<16x128xf32>
    %19 = vector.extract_strided_slice %17 {offsets = [0, 0], sizes = [16, 32], strides = [1, 1]} : vector<16x128xf32> to vector<16x32xf32>
    %20 = vector.extract_strided_slice %18 {offsets = [0, 32], sizes = [16, 32], strides = [1, 1]} : vector<16x128xf32> to vector<16x32xf32>
    %21 = vector.extract_strided_slice %17 {offsets = [0, 64], sizes = [16, 3], strides = [1, 1]} : vector<16x128xf32> to vector<16x3xf32>
    %22 = vector.extract_strided_slice %18 {offsets = [0, 64], sizes = [16, 3], strides = [1, 1]} : vector<16x128xf32> to vector<16x3xf32>
    %23 = arith.subf %21, %22 : vector<16x3xf32>
    %24 = vector.extract_strided_slice %17 {offsets = [0, 67], sizes = [16, 3], strides = [1, 1]} : vector<16x128xf32> to vector<16x3xf32>
    %25 = vector.extract_strided_slice %18 {offsets = [0, 67], sizes = [16, 3], strides = [1, 1]} : vector<16x128xf32> to vector<16x3xf32>
    %26 = arith.subf %24, %25 : vector<16x3xf32>
    %27 = arith.mulf %23, %23 : vector<16x3xf32>
    %cst_7 = arith.constant dense<0.000000e+00> : vector<16xf32>
    %28 = vector.multi_reduction <add>, %27, %cst_7 [1] : vector<16x3xf32> to vector<16xf32>
    %29 = vector.shape_cast %28 : vector<16xf32> to vector<16x1xf32>
    %30 = arith.mulf %26, %26 : vector<16x3xf32>
    %cst_8 = arith.constant dense<0.000000e+00> : vector<16xf32>
    %31 = vector.multi_reduction <add>, %30, %cst_8 [1] : vector<16x3xf32> to vector<16xf32>
    %32 = vector.shape_cast %31 : vector<16xf32> to vector<16x1xf32>
    %33 = arith.mulf %23, %26 : vector<16x3xf32>
    %cst_9 = arith.constant dense<0.000000e+00> : vector<16xf32>
    %34 = vector.multi_reduction <add>, %33, %cst_9 [1] : vector<16x3xf32> to vector<16xf32>
    %35 = vector.shape_cast %34 : vector<16xf32> to vector<16x1xf32>
    %36 = math.sqrt %29 : vector<16x1xf32>
    %37 = math.sqrt %32 : vector<16x1xf32>
    %cst_10 = arith.constant 1.000000e-30 : f32
    %38 = vector.broadcast %cst_10 : f32 to vector<16x1xf32>
    %39 = arith.maximumf %29, %38 : vector<16x1xf32>
    %40 = math.rsqrt %39 : vector<16x1xf32>
    %cst_11 = arith.constant 1.000000e-30 : f32
    %41 = vector.broadcast %cst_11 : f32 to vector<16x1xf32>
    %42 = arith.maximumf %32, %41 : vector<16x1xf32>
    %43 = math.rsqrt %42 : vector<16x1xf32>
    %44 = arith.mulf %40, %43 : vector<16x1xf32>
    %45 = arith.mulf %35, %44 : vector<16x1xf32>
    %46 = arith.addf %19, %20 : vector<16x32xf32>
    %c0_12 = arith.constant 0 : index
    %c0_13 = arith.constant 0 : index
    %47 = vector.load %arg5[%c0_12, %c0_13] : memref<3x32xf32, #tpu.memory_space<vmem>>, vector<1x32xf32>
    %48 = vector.broadcast %36 : vector<16x1xf32> to vector<16x32xf32>
    %49 = vector.broadcast %47 : vector<1x32xf32> to vector<16x32xf32>
    %50 = arith.mulf %48, %49 : vector<16x32xf32>
    %51 = arith.addf %46, %50 : vector<16x32xf32>
    %c1 = arith.constant 1 : index
    %c0_14 = arith.constant 0 : index
    %52 = vector.load %arg5[%c1, %c0_14] : memref<3x32xf32, #tpu.memory_space<vmem>>, vector<1x32xf32>
    %53 = vector.broadcast %37 : vector<16x1xf32> to vector<16x32xf32>
    %54 = vector.broadcast %52 : vector<1x32xf32> to vector<16x32xf32>
    %55 = arith.mulf %53, %54 : vector<16x32xf32>
    %56 = arith.addf %51, %55 : vector<16x32xf32>
    %c2 = arith.constant 2 : index
    %c0_15 = arith.constant 0 : index
    %57 = vector.load %arg5[%c2, %c0_15] : memref<3x32xf32, #tpu.memory_space<vmem>>, vector<1x32xf32>
    %58 = vector.broadcast %45 : vector<16x1xf32> to vector<16x32xf32>
    %59 = vector.broadcast %57 : vector<1x32xf32> to vector<16x32xf32>
    %60 = arith.mulf %58, %59 : vector<16x32xf32>
    %61 = arith.addf %56, %60 : vector<16x32xf32>
    %c0_16 = arith.constant 0 : index
    %c0_17 = arith.constant 0 : index
    %62 = vector.load %arg6[%c0_16, %c0_17] : memref<1x32xf32, #tpu.memory_space<vmem>>, vector<1x32xf32>
    %63 = vector.broadcast %62 : vector<1x32xf32> to vector<16x32xf32>
    %64 = arith.addf %61, %63 : vector<16x32xf32>
    %cst_18 = arith.constant 0.000000e+00 : f32
    %65 = vector.broadcast %cst_18 : f32 to vector<16x32xf32>
    %66 = arith.maximumf %64, %65 : vector<16x32xf32>
    %c0_19 = arith.constant 0 : index
    %c0_20 = arith.constant 0 : index
    %67 = vector.load %arg7[%c0_19, %c0_20] : memref<32x32xf32, #tpu.memory_space<vmem>>, vector<32x32xf32>
    %cst_21 = arith.constant dense<0.000000e+00> : vector<16x32xf32>
    %68 = tpu.matmul %66, %67, %cst_21 {dimension_numbers = #tpu.dot_dimension_numbers<[1], [0], [0], [1], [0, 0, 1, 1], [], []>} : vector<16x32xf32>, vector<32x32xf32>, vector<16x32xf32> -> vector<16x32xf32>
    %c0_22 = arith.constant 0 : index
    %c0_23 = arith.constant 0 : index
    %69 = vector.load %arg8[%c0_22, %c0_23] : memref<1x32xf32, #tpu.memory_space<vmem>>, vector<1x32xf32>
    %70 = vector.broadcast %69 : vector<1x32xf32> to vector<16x32xf32>
    %71 = arith.addf %68, %70 : vector<16x32xf32>
    %cst_24 = arith.constant 0.000000e+00 : f32
    %72 = vector.broadcast %cst_24 : f32 to vector<16x32xf32>
    %73 = arith.maximumf %71, %72 : vector<16x32xf32>
    %c0_25 = arith.constant 0 : index
    %c0_26 = arith.constant 0 : index
    %74 = vector.load %arg9[%c0_25, %c0_26] : memref<32x32xf32, #tpu.memory_space<vmem>>, vector<32x32xf32>
    %cst_27 = arith.constant dense<0.000000e+00> : vector<16x32xf32>
    %75 = tpu.matmul %73, %74, %cst_27 {dimension_numbers = #tpu.dot_dimension_numbers<[1], [0], [0], [1], [0, 0, 1, 1], [], []>} : vector<16x32xf32>, vector<32x32xf32>, vector<16x32xf32> -> vector<16x32xf32>
    %c0_28 = arith.constant 0 : index
    %c0_29 = arith.constant 0 : index
    %76 = vector.load %arg10[%c0_28, %c0_29] : memref<1x32xf32, #tpu.memory_space<vmem>>, vector<1x32xf32>
    %77 = vector.broadcast %76 : vector<1x32xf32> to vector<16x32xf32>
    %78 = arith.addf %75, %77 : vector<16x32xf32>
    %cst_30 = arith.constant 0.000000e+00 : f32
    %79 = vector.broadcast %cst_30 : f32 to vector<16x32xf32>
    %80 = arith.maximumf %78, %79 : vector<16x32xf32>
    %c0_31 = arith.constant 0 : index
    %c0_32 = arith.constant 0 : index
    %81 = vector.load %arg11[%c0_31, %c0_32] : memref<1x32xf32, #tpu.memory_space<vmem>>, vector<1x32xf32>
    %82 = vector.broadcast %81 : vector<1x32xf32> to vector<16x32xf32>
    %83 = arith.mulf %80, %82 : vector<16x32xf32>
    %cst_33 = arith.constant dense<0.000000e+00> : vector<16xf32>
    %84 = vector.multi_reduction <add>, %83, %cst_33 [1] : vector<16x32xf32> to vector<16xf32>
    %85 = vector.shape_cast %84 : vector<16xf32> to vector<16x1xf32>
    %86 = vector.broadcast %85 : vector<16x1xf32> to vector<16x3xf32>
    %87 = arith.mulf %23, %86 : vector<16x3xf32>
    %cst_34 = arith.constant -1.000000e+02 : f32
    %cst_35 = arith.constant 1.000000e+02 : f32
    %88 = vector.broadcast %cst_34 : f32 to vector<16x3xf32>
    %89 = arith.maximumf %88, %87 : vector<16x3xf32>
    %90 = vector.broadcast %cst_35 : f32 to vector<16x3xf32>
    %91 = arith.minimumf %90, %89 : vector<16x3xf32>
    %cst_36 = arith.constant 1.000000e+00 : f32
    %92 = vector.broadcast %cst_36 : f32 to vector<16x1xf32>
    %cst_37 = arith.constant 0.000000e+00 : f32
    %93 = vector.broadcast %cst_37 : f32 to vector<16x92xf32>
    %94 = tpu.concatenate %73, %91, %92, %93 in 1 : vector<16x32xf32>, vector<16x3xf32>, vector<16x1xf32>, vector<16x92xf32> -> vector<16x128xf32>
    %95 = arith.truncf %94 : vector<16x128xf32> to vector<16x128xbf16>
    %cst_38 = arith.constant dense<0.000000e+00> : vector<8x128xf32>
    %96 = tpu.matmul %10, %95, %cst_38 {dimension_numbers = #tpu.dot_dimension_numbers<[0], [0], [1], [1], [0, 1, 1, 1], [], []>} : vector<16x8xbf16>, vector<16x128xbf16>, vector<8x128xf32> -> vector<8x128xf32>
    %c0_39 = arith.constant 0 : index
    %c0_40 = arith.constant 0 : index
    %c0_41 = arith.constant 0 : index
    %97 = vector.load %arg12[%c0_39, %c0_40, %c0_41] : memref<1x8x128xf32, #tpu.memory_space<vmem>>, vector<1x8x128xf32>
    %98 = vector.shape_cast %97 : vector<1x8x128xf32> to vector<8x128xf32>
    %99 = arith.addf %98, %96 : vector<8x128xf32>
    %c0_42 = arith.constant 0 : index
    %c0_43 = arith.constant 0 : index
    %c0_44 = arith.constant 0 : index
    %100 = vector.load %arg12[%c0_42, %c0_43, %c0_44] : memref<1x8x128xf32, #tpu.memory_space<vmem>>, vector<1x8x128xf32>
    %101 = vector.shape_cast %100 : vector<1x8x128xf32> to vector<8x128xf32>
    %102 = vector.shape_cast %99 : vector<8x128xf32> to vector<1x8x128xf32>
    tpu.vector_store %arg12[%c0_42, %c0_43, %c0_44], %102 {strides = array<i32>} : memref<1x8x128xf32, #tpu.memory_space<vmem>>, vector<1x8x128xf32>,
    return
  }
  func.func @transform_0(%arg0: i32, %arg1: i32) -> (i32, i32) {
    %c2_i32 = arith.constant 2 : i32
    %0 = arith.muli %arg0, %c2_i32 : i32
    %1 = arith.addi %0, %arg1 : i32
    %c0_i32 = arith.constant 0 : i32
    %c0_i32_0 = arith.constant 0 : i32
    return %1, %c0_i32 : i32, i32
  }
  func.func @transform_1(%arg0: i32, %arg1: i32) -> (i32, i32) {
    %c2_i32 = arith.constant 2 : i32
    %0 = arith.muli %arg0, %c2_i32 : i32
    %1 = arith.addi %0, %arg1 : i32
    %c0_i32 = arith.constant 0 : i32
    %c0_i32_0 = arith.constant 0 : i32
    return %1, %c0_i32 : i32, i32
  }
  func.func @transform_2(%arg0: i32, %arg1: i32) -> (i32, i32) {
    %c0_i32 = arith.constant 0 : i32
    %c0_i32_0 = arith.constant 0 : i32
    %c0_i32_1 = arith.constant 0 : i32
    return %c0_i32, %c0_i32_0 : i32, i32
  }
  func.func @transform_3(%arg0: i32, %arg1: i32) -> (i32, i32) {
    %c0_i32 = arith.constant 0 : i32
    %c0_i32_0 = arith.constant 0 : i32
    %c0_i32_1 = arith.constant 0 : i32
    return %c0_i32, %c0_i32_0 : i32, i32
  }
  func.func @transform_4(%arg0: i32, %arg1: i32) -> (i32, i32) {
    %c0_i32 = arith.constant 0 : i32
    %c0_i32_0 = arith.constant 0 : i32
    %c0_i32_1 = arith.constant 0 : i32
    return %c0_i32, %c0_i32_0 : i32, i32
  }
  func.func @transform_5(%arg0: i32, %arg1: i32) -> (i32, i32) {
    %c0_i32 = arith.constant 0 : i32
    %c0_i32_0 = arith.constant 0 : i32
    %c0_i32_1 = arith.constant 0 : i32
    return %c0_i32, %c0_i32_0 : i32, i32
  }
  func.func @transform_6(%arg0: i32, %arg1: i32) -> (i32, i32) {
    %c0_i32 = arith.constant 0 : i32
    %c0_i32_0 = arith.constant 0 : i32
    %c0_i32_1 = arith.constant 0 : i32
    return %c0_i32, %c0_i32_0 : i32, i32
  }
  func.func @transform_7(%arg0: i32, %arg1: i32) -> (i32, i32) {
    %c0_i32 = arith.constant 0 : i32
    %c0_i32_0 = arith.constant 0 : i32
    %c0_i32_1 = arith.constant 0 : i32
    return %c0_i32, %c0_i32_0 : i32, i32
  }
  func.func @transform_8(%arg0: i32, %arg1: i32) -> (i32, i32) {
    %c0_i32 = arith.constant 0 : i32
    %c0_i32_0 = arith.constant 0 : i32
    %c0_i32_1 = arith.constant 0 : i32
    return %c0_i32, %c0_i32_0 : i32, i32
  }
  func.func @transform_9(%arg0: i32, %arg1: i32) -> (i32, i32) {
    %c0_i32 = arith.constant 0 : i32
    %c0_i32_0 = arith.constant 0 : i32
    %c0_i32_1 = arith.constant 0 : i32
    return %c0_i32, %c0_i32_0 : i32, i32
  }
  func.func @transform_10(%arg0: i32, %arg1: i32) -> (i32, i32, i32) {
    %c0_i32 = arith.constant 0 : i32
    %c0_i32_0 = arith.constant 0 : i32
    %c0_i32_1 = arith.constant 0 : i32
    return %arg0, %c0_i32, %c0_i32_0 : i32, i32, i32
  }
}

</mosaic_0001>

<bundles_post_ra>
// kernel: tpu_custom_call.1
= control target key start
LH: loop header
LB: loop body
LE: loop exit
PB: predicated region body
PF: predicated region fallthrough
CT: control target
= control target key end

     0   :  { %15 = vsyncpa [#allocation3], 0  ;;  %s1546_s0 = inlined_call_operand.vmem [shape: s32[64,1], index: 0, kind: input, shape index: {}]   ;;  %s1547_s1 = inlined_call_operand.vmem [shape: s32[64,1], index: 1, kind: input, shape index: {}]   ;;  %s1548_s2 = inlined_call_operand.vmem [shape: bf16[8,128], index: 2, kind: input, shape index: {}]   ;;  %s1549_s3 = inlined_call_operand.vmem [shape: f32[3,32], index: 3, kind: input, shape index: {}]   ;;  %s1550_s4 = inlined_call_operand.vmem [shape: f32[1,32], index: 4, kind: input, shape index: {}]   ;;  %s1551_s5 = inlined_call_operand.vmem [shape: f32[32,32], index: 5, kind: input, shape index: {}]   ;;  %s1552_s6 = inlined_call_operand.vmem [shape: f32[1,32], index: 6, kind: input, shape index: {}]   ;;  %s1553_s7 = inlined_call_operand.vmem [shape: f32[32,32], index: 7, kind: input, shape index: {}]   ;;  %s1554_s8 = inlined_call_operand.vmem [shape: f32[1,32], index: 8, kind: input, shape index: {}]   ;;  %s1555_s9 = inlined_call_operand.vmem [shape: f32[1,32], index: 9, kind: input, shape index: {}]   ;;  %s1556_s10 = inlined_call_operand.hbm [shape: f32[2,8,128], index: 10, kind: output, shape index: {}]  }
   0x1   :  { %17 = vsyncpa [#allocation3 + $0x1], 0  ;;  %s1238_s13 = smov 0   ;;  %s1240_s14 = smov 0  }
   0x2   :  { %s1242_s15 = smov 0   ;;  %s1244_s16 = smov 0  }
   0x3   :  { %s1246_s17 = smov 0   ;;  %s1248_s18 = smov 0  }
   0x4   :  { %s1250_s19 = smov 0   ;;  %s1252_s20 = smov 0  }
   0x5 LB: > { %1561 = sst [smem:[#allocation5_spill]] %s1154_s15  ;;  %s935_s21 = sadd.s32 4294967295, %s1174_s20   ;;  %s1174_s20 = sphi %s1252_s20, %s23_s20   ;;  %s1170_s19 = sphi %s1250_s19, %s1574_s19   ;;  %s1166_s18 = sphi %s1248_s18, %s1573_s18   ;;  %s1162_s17 = sphi %s1246_s17, %s1572_s17   ;;  %s1158_s16 = sphi %s1244_s16, %s1577_s16   ;;  %s1154_s15 = sphi %s1242_s15, %s1570_s15   ;;  %s1150_s14 = sphi %s1240_s14, %s1576_s14   ;;  %s1146_s13 = sphi %s1238_s13, %s1575_s13  }
   0x6   : > { %1562 = sst [smem:[#allocation6_spill]] %s1166_s18  ;;  %s936_s22 = sadd.s32 4294967294, %s1174_s20  }
   0x7   : > { %1563 = sst [smem:[#allocation7_spill]] %s1170_s19  ;;  %s32_s23 = sadd.s32 1, %s1166_s18 }
   0x8   : > { %p33_p0 = scmp.ge.s32.totalorder %s32_s23, 2  ;;  %s35_s24 = sadd.s32 1, %s1170_s19 }
   0x9   : > { %p280_p1 = scmp.ne.s32.totalorder %s1154_s15, %s1150_s14  ;;  %p281_p2 = scmp.eq.s32.totalorder %s935_s21, 3 }
   0xa   : > { %s1579_s23 = smov (%p33_p0, %s32_s23), 0  ;;  %s1581_s24 = smov (!%p33_p0, %s35_s24), %s1170_s19 }
   0xb   : > { %1564 = sst [smem:[#allocation8_spill]] %s1579_s23  ;;  %p1287_p3 = por %p281_p2, %p280_p1 }
   0xc   : > { %p286_p4 = scmp.ne.s32.totalorder %s1150_s14, %s1146_s13  ;;  %p37_p5 = scmp.ge.s32.totalorder %s1581_s24, 2 }
   0xd   : > { %p287_p6 = scmp.eq.s32.totalorder %s936_s22, 3  ;;  %p943_p7 = scmp.ge.s32.totalorder %s1174_s20, 1 }
   0xe   : > { %p355_p8 = scmp.lt.s32.totalorder %s1174_s20, 5  ;;  %s1583_s24 = smov (%p37_p5, %s1581_s24), 0 }
   0xf   : > { %1566 = sst [smem:[#allocation9_spill]] %s1583_s24  ;;  %p1297_p9 = por %p287_p6, %p286_p4 }
  0x10   : > { %p356_p10 = pnand %p943_p7, %p355_p8  ;;  %s267_s27 = ssub.s32 %s1170_s19, %s1583_s24 }
  0x11   : > { %s270_s28 = sadd.s32 1, %s1154_s15  ;;  %p268_p11 = scmp.eq.s32.totalorder %s267_s27, 0 }
  0x12   : > { %359 = sbr.rel (%p356_p10) target bundleno = 1287 (0x507), region = 60  ;;  %s399_s30 = sand.u32 (!%p356_p10), 1, %s1150_s14  }
  0x13   : > { %s1305_s29 = scalar_select %p268_p11, %s1154_s15, %s270_s28  }
  0x14   : > { %s945_s11 = sshll.u32 (!%p356_p10), %s1162_s17, 1  ;;  %s944_s12 = sshll.u32 (!%p356_p10), %s399_s30, 3 }
  0x15   : > { %1568 = sst [smem:[#allocation10_spill]] %s1305_s29  ;;  %s403_s21 = sadd.s32 (!%p356_p10), %s1158_s16, %s945_s11 }
  0x16   : > { %s946_s22 = sshll.u32 (!%p356_p10), %s403_s21, 1  ;;  %s1318_s15 = scalar_lea.vmem (!%p356_p10), [#allocation2], %s944_s12 }
  0x17   : > { %p405_p12 = scmp.lt.s32.totalorder %s946_s22, 7  ;;  %p951_p13 = scmp.ne.s32.totalorder %s1158_s16, 0 }
  0x19   : > { %s1585_s22 = smov (!%p405_p12, %s946_s22), 7  ;;  %426 = sbr.rel (%p951_p13) target bundleno = 32 (0x20), region = 64 }
  0x1a   : > { %s947_s23 = sshll.u32 %s1585_s22, 3 }
  0x1b   : > { %s408_s27 = scalar_lea.vmem %s1546_s0, %s947_s23  ;;  %s418_s29 = scalar_lea.vmem %s1547_s1, %s947_s23 }
  0x1e   : > { %v1176_v0 = vmov 0.0  }
  0x1f   : > { %427 = vst [vmem:[%s1318_s15] sm:$0xff] %v1176_v0 }
  0x20 PF: > { %v430_v1 = vld [vmem:[%s418_s29] sm:$0xff]  ;;  %v1177_v3 = vmov 0   ;;  %v431_v4 = vld [vmem:[%s418_s29 + $0x8] sm:$0xff]  ;;  %vm465_vm0 = vcmask 1043456   ;;  %v432_v8 = vlaneseq  ;;  %vm461_vm5 = vcmask 64512   ;;  %s1179_s16 = smov 125  }
  0x21   : > { %v428_v2 = vld [vmem:[%s408_s27] sm:$0xff]  ;;  %1051 = vset.pattern.permute.xlu1 %v1177_v3  ;;  %1050 = vset.pattern.permute.xlu0 %v1177_v3  ;;  %v429_v5 = vld [vmem:[%s408_s27 + $0x8] sm:$0xff]  ;;  %v1178_v14 = vmov 0.0   ;;  %s1180_s23 = smov 61   ;;  %s1181_s24 = smov 64   ;;  %vm512_vm6 = vcmask 23552  }
  0x22   : > { %448 = vperm.xlu1 %1051, %v430_v1   ;;  %435 = vperm.xlu0 %1050, %v428_v2   ;;  %v460_v6 = vld [vmem:[%s1548_s2] sm:$0xf]  ;;  %v433_v11 = vand.u32 127, %v432_v8  ;;  %s1182_s29 = smov 96   ;;  %v690_v58 = vld [vmem:[%s1551_s5 + $0x18] sm:$0xff]  ;;  %v689_v62 = vld [vmem:[%s1551_s5 + $0x10] sm:$0xff] }
  0x23   : > { %v467_v7 = vsel %vm465_vm0, %v460_v6, 0  ;;  %714 = vmatpush.msra.mxu2 %v690_v58  ;;  %v688_v1 = vld [vmem:[%s1551_s5 + $0x8] sm:$0xff]  ;;  %v1058_v58 = vld [vmem:[%s1549_s3 + $0x1] ss:$0 sm:$0xff]  ;;  %s850_s11 = sshll.u32 %s1318_s15, 4  ;;  %s838_s21 = scalar_lea.sflag [#allocation3], %s399_s30  ;;  %s851_s11 = int_to_ptr.vmem [resolvable:$true] %s850_s11 }
  0x24   : > { %476 = vmatpush.bf16.msra.mxu0 %v467_v7  ;;  %493 = vmatpush.bf16.msra.mxu1 %v467_v7  ;;  %s1100_s18 = scalar_lea.hbm %s1556_s10, 16 }
  0x25   : > { %715 = vmatpush.msra.mxu2 %v689_v62 }
  0x27   : > { %716 = vmatpush.msra.mxu2 %v688_v1 }
  0x2a   : > { %451 = vperm.xlu1 %1051, %v431_v4   ;;  %438 = vperm.xlu0 %1050, %v429_v5  }
  0x94   : > { %v449_v9 = vpop.permute.xlu1 %448  ;;  %v436_v10 = vpop.permute.xlu0 %435 }
  0x95   : > { %vm453_vm1 = vcmp.eq.s32.totalorder %v433_v11, %v449_v9  ;;  %vm440_vm2 = vcmp.eq.s32.totalorder %v433_v11, %v436_v10  ;;  %v687_v9 = vld [vmem:[%s1551_s5] sm:$0xff] }
  0x96   : > { %v954_v15 = vsel %vm453_vm1, 1.0, %v1178_v14  ;;  %v952_v16 = vsel %vm440_vm2, 1.0, %v1178_v14  ;;  %717 = vmatpush.msra.mxu2 %v687_v9 }
  0x9c   : > { %v452_v12 = vpop.permute.xlu1 %451  ;;  %v439_v13 = vpop.permute.xlu0 %438 }
  0x9d   : > { %vm454_vm3 = vcmp.eq.s32.totalorder %v433_v11, %v452_v12  ;;  %vm441_vm4 = vcmp.eq.s32.totalorder %v433_v11, %v439_v13 }
  0x9e   : > { %v955_v17 = vsel %vm454_vm3, 1.0, %v1178_v14  ;;  %v953_v18 = vsel %vm441_vm4, 1.0, %v1178_v14 }
  0x9f   : > { %v459_v19 = vpack.c.bf16 %v955_v17, %v954_v15  ;;  %v446_v20 = vpack.c.bf16 %v953_v18, %v952_v16 }
  0xa1   : > { %956 = vmatmul.msk.bf16.vlgmr.msra.gmra.mxu0 %vm461_vm5, %v446_v20  ;;  %957 = vmatmul.msk.bf16.vlgmr.msra.gmra.mxu1 %vm461_vm5, %v459_v19 }
 0x11e   : > { %v1325_v21 = vpop.f32.mrf.mxu0  ;;  %v495_v22 = vpop.f32.mrf.mxu1 }
 0x11f   : > { %v1328_v23 = vsub.f32 %v1325_v21, %v495_v22 }
 0x121   : > { %533 = vrot.lane.b32.xlu2 %v1328_v23, %s1179_s16  ;;  %v502_v24 = vmul.f32 %v1328_v23, %v1328_v23 }
 0x123   : > { %519 = vrot.lane.b32.xlu1 %v502_v24, %s1180_s23  ;;  %506 = vrot.lane.b32.xlu0 %v502_v24, %s1181_s24 }
 0x126   : > { %v1333_v25 = vpop.f32.mrf.mxu0  ;;  %v497_v26 = vpop.f32.mrf.mxu1 }
 0x127   : > { %v1336_v27 = vsub.f32 %v1333_v25, %v497_v26 }
 0x129   : > { %535 = vrot.lane.b32.xlu2 %v1336_v27, %s1179_s16  ;;  %v503_v28 = vmul.f32 %v1336_v27, %v1336_v27 }
 0x12b   : > { %521 = vrot.lane.b32.xlu0 %v503_v28, %s1180_s23 }
 0x131   : > { %508 = vrot.lane.b32.xlu2 %v503_v28, %s1181_s24 }
 0x17b   : > { %v534_v29 = vpop.permute.xlu2 %533 }
 0x17c   : > { %v539_v30 = vmul.f32 %v534_v29, %v1328_v23 }
 0x17e   : > { %543 = vrot.lane.b32.xlu1 %v539_v30, %s1181_s24 }
 0x183   : > { %v536_v31 = vpop.permute.xlu2 %535 }
 0x184   : > { %v540_v32 = vmul.f32 %v536_v31, %v1336_v27  ;;  %v730_v31 = vld [vmem:[%s1553_s7 + $0x18] sm:$0xff] }
 0x185   : > { %753 = vmatpush.msra.mxu3 %v730_v31 }
 0x186   : > { %545 = vrot.lane.b32.xlu2 %v540_v32, %s1181_s24 }
 0x18b   : > { %v509_v37 = vpop.permute.xlu2 %508 }
 0x18c   : > { %v516_v38 = vsel %vm512_vm6, %v509_v37, 0.0 }
 0x195   : > { %v507_v33 = vpop.permute.xlu0 %506  ;;  %v520_v35 = vpop.permute.xlu1 %519 }
 0x196   : > { %v513_v34 = vsel %vm512_vm6, %v507_v33, 0.0  ;;  %v525_v36 = vsel %vm512_vm6, %v520_v35, 0.0 }
 0x197   : > { %514 = vadd.xlane.f32.xlu0 %v513_v34 }
 0x19d   : > { %v522_v39 = vpop.permute.xlu0 %521 }
 0x19e   : > { %v528_v40 = vsel %vm512_vm6, %v522_v39, 0.0 }
 0x1a8   : > { %526 = vadd.xlane.f32.xlu1 %v525_v36 }
 0x1ab   : > { %653 = vrot.lane.b32.xlu0 %v495_v22, %s1182_s29 }
 0x1af   : > { %517 = vadd.xlane.f32.xlu2 %v516_v38 }
 0x1b7   : > { %529 = vadd.xlane.f32.xlu2 %v528_v40  ;;  %v1057_v40 = vld [vmem:[%s1549_s3] ss:$0 sm:$0xff] }
 0x1cf   : > { %655 = vrot.lane.b32.xlu2 %v497_v26, %s1182_s29 }
 0x1e0   : > { %v546_v43 = vpop.permute.xlu2 %545 }
 0x1e1   : > { %v552_v44 = vsel %vm512_vm6, %v546_v43, 0.0 }
 0x1f0   : > { %v544_v41 = vpop.permute.xlu1 %543 }
 0x1f1   : > { %v549_v42 = vsel %vm512_vm6, %v544_v41, 0.0 }
 0x1f2   : > { %550 = vadd.xlane.f32.xlu1 %v549_v42 }
 0x1f5   : > { %801 = vxpose.xlu2.c.b16.start.end [1/1] (short) (narrow) %v446_v20, 16 }
 0x1fa   : > { %553 = vadd.xlane.f32.xlu1 %v552_v44 }
 0x20a   : > { %v1351_v45 = vpop.xlane.xlu0 %514 }
 0x20b   : > { %1064 = vrsqrt.f32 %v1351_v45  ;;  %v1366_v52 = vmax.f32 %v1351_v45, 1e-30  ;;  %vm562_vm7 = vcmp.eq.f32.partialorder %v1351_v45, inf  ;;  %v565_v37 = vand.u32 2147483648, %v1351_v45 }
 0x20c   : > { %vm564_vm8 = vcmp.eq.f32.partialorder %v1351_v45, 0.0 }
 0x20d   : > { %vm611_vm15 = vweird.f32 %v1366_v52 }
 0x211   : > { %v1065_v48 = vpop.eup %1064 }
 0x212   : > { %v556_v50 = vmul.f32 %v1065_v48, %v1351_v45 }
 0x214   : > { %v557_v55 = vmul.f32 %v1065_v48, %v556_v50 }
 0x216   : > { %v558_v60 = vmul.f32 0.5, %v557_v55 }
 0x218   : > { %v559_v5 = vsub.f32 1.5, %v558_v60 }
 0x21a   : > { %v560_v13 = vmul.f32 %v1065_v48, %v559_v5 }
 0x21b   : > { %v1356_v47 = vpop.xlane.xlu1 %526 }
 0x21c   : > { %1066 = vrsqrt.f32 %v1356_v47  ;;  %v1360_v49 = vmax.f32 %v1356_v47, 1e-30  ;;  %v561_v22 = vmul.f32 %v560_v13, %v1351_v45  ;;  %vm586_vm9 = vcmp.eq.f32.partialorder %v1356_v47, inf }
 0x21d   : > { %vm588_vm13 = vcmp.eq.f32.partialorder %v1356_v47, 0.0 }
 0x21e   : > { %v563_v34 = vsel %vm562_vm7, %v1351_v45, %v561_v22  ;;  %v589_v45 = vand.u32 2147483648, %v1356_v47  ;;  %vm633_vm12 = vweird.f32 %v1360_v49 }
 0x21f   : > { %v566_v42 = vsel %vm564_vm8, %v565_v37, %v563_v34  ;;  %v1061_v37 = vld [vmem:[%s1552_s6] ss:$0 sm:$0xff] }
 0x222   : > { %v1353_v46 = vpop.xlane.xlu2 %517  ;;  %v1067_v53 = vpop.eup %1066 }
 0x223   : > { %1068 = vrsqrt.f32 %v1353_v46  ;;  %v580_v54 = vmul.f32 %v1067_v53, %v1356_v47  ;;  %v1385_v63 = vmax.f32 %v1353_v46, 1e-30  ;;  %vm574_vm1 = vcmp.eq.f32.partialorder %v1353_v46, inf }
 0x224   : > { %1070 = vrsqrt.f32 %v1360_v49  ;;  %vm576_vm4 = vcmp.eq.f32.partialorder %v1353_v46, 0.0 }
 0x225   : > { %v581_v61 = vmul.f32 %v1067_v53, %v580_v54 }
 0x227   : > { %v582_v6 = vmul.f32 0.5, %v581_v61 }
 0x229   : > { %v1069_v57 = vpop.eup %1068  ;;  %v583_v14 = vsub.f32 1.5, %v582_v6 }
 0x22a   : > { %v1363_v51 = vpop.xlane.xlu2 %529  ;;  %v1379_v59 = vpop.eup %1070  ;;  %v568_v3 = vmul.f32 %v1069_v57, %v1353_v46 }
 0x22b   : > { %1072 = vrsqrt.f32 %v1363_v51  ;;  %v1374_v56 = vmax.f32 %v1363_v51, 1e-30  ;;  %v628_v4 = vmul.f32 %v1379_v59, %v1360_v49  ;;  %v584_v24 = vmul.f32 %v1067_v53, %v583_v14  ;;  %v654_v53 = vpop.permute.xlu0 %653 }
 0x22c   : > { %1074 = vrsqrt.f32 %v1366_v52  ;;  %v569_v10 = vmul.f32 %v1069_v57, %v568_v3  ;;  %vm634_vm10 = vweird.f32 %v1379_v59  ;;  %v659_v49 = vadd.f32 %v654_v53, %v1325_v21 }
 0x22d   : > { %1076 = vrsqrt.f32 %v1374_v56  ;;  %v629_v11 = vmul.f32 %v1379_v59, %v628_v4  ;;  %v585_v35 = vmul.f32 %v584_v24, %v1356_v47  ;;  %vm635_vm14 = vmor %vm633_vm12, %vm634_vm10  ;;  %v577_v21 = vand.u32 2147483648, %v1353_v46 }
 0x22e   : > { %1078 = vrsqrt.f32 %v1385_v63  ;;  %v570_v18 = vmul.f32 0.5, %v569_v10  ;;  %vm598_vm2 = vcmp.eq.f32.partialorder %v1363_v51, inf  ;;  %v601_v9 = vand.u32 2147483648, %v1363_v51 }
 0x22f   : > { %v630_v19 = vmul.f32 0.5, %v629_v11  ;;  %v587_v48 = vsel %vm586_vm9, %v1356_v47, %v585_v35  ;;  %vm643_vm6 = vweird.f32 %v1374_v56  ;;  %vm600_vm7 = vcmp.eq.f32.partialorder %v1363_v51, 0.0 }
 0x230   : > { %v571_v30 = vsub.f32 1.5, %v570_v18  ;;  %v590_v61 = vsel %vm588_vm13, %v589_v45, %v587_v48  ;;  %vm621_vm9 = vweird.f32 %v1385_v63  ;;  %v1063_v45 = vld [vmem:[%s1555_s9] ss:$0 sm:$0xff]  ;;  %vm794_vm12 = vcmask 285696  }
 0x231   : > { %v1073_v0 = vpop.eup %1072  ;;  %v631_v32 = vsub.f32 1.5, %v630_v19  ;;  %v669_v4 = vmul.f32 %v1058_v58, %v590_v61  ;;  %vm797_vm13 = vcmask 293888  }
 0x232   : > { %v1390_v2 = vpop.eup %1074  ;;  %v592_v7 = vmul.f32 %v1073_v0, %v1363_v51  ;;  %v572_v41 = vmul.f32 %v1069_v57, %v571_v30  ;;  %v663_v57 = vmul.f32 %v1057_v40, %v566_v42  ;;  %v656_v18 = vpop.permute.xlu2 %655 }
 0x233   : > { %v606_v8 = vmul.f32 %v1390_v2, %v1366_v52  ;;  %v1404_v12 = vpop.eup %1076  ;;  %v632_v43 = vmul.f32 %v1379_v59, %v631_v32  ;;  %vm612_vm11 = vweird.f32 %v1390_v2  ;;  %v1059_v52 = vld [vmem:[%s1549_s3 + $0x2] ss:$0 sm:$0xff] }
 0x234   : > { %v593_v15 = vmul.f32 %v1073_v0, %v592_v7  ;;  %v1407_v17 = vpop.eup %1078  ;;  %v638_v20 = vmul.f32 %v1404_v12, %v1374_v56  ;;  %v573_v60 = vmul.f32 %v572_v41, %v1353_v46  ;;  %vm613_vm0 = vmor %vm611_vm15, %vm612_vm11  ;;  %v665_v5 = vadd.f32 %v663_v57, %v659_v49 }
 0x235   : > { %v607_v16 = vmul.f32 %v1390_v2, %v606_v8  ;;  %v616_v29 = vmul.f32 %v1407_v17, %v1385_v63  ;;  %v636_v62 = vsel %vm635_vm14, %v1379_v59, %v632_v43  ;;  %vm644_vm3 = vweird.f32 %v1404_v12  ;;  %vm964_vm14 = vmpackc.low %vm797_vm13, %vm797_vm13 }
 0x236   : > { %v594_v26 = vmul.f32 0.5, %v593_v15  ;;  %v639_v33 = vmul.f32 %v1404_v12, %v638_v20  ;;  %v575_v6 = vsel %vm574_vm1, %v1353_v46, %v573_v60  ;;  %vm622_vm5 = vweird.f32 %v1407_v17  ;;  %vm645_vm8 = vmor %vm643_vm6, %vm644_vm3  ;;  %v1060_v46 = vld [vmem:[%s1550_s4] ss:$0 sm:$0xff] }
 0x237   : > { %v608_v28 = vmul.f32 0.5, %v607_v16  ;;  %v617_v39 = vmul.f32 %v1407_v17, %v616_v29  ;;  %v578_v11 = vsel %vm576_vm4, %v577_v21, %v575_v6  ;;  %v671_v14 = vadd.f32 %v669_v4, %v665_v5  ;;  %vm623_vm10 = vmor %vm621_vm9, %vm622_vm5 }
 0x238   : > { %v595_v36 = vsub.f32 1.5, %v594_v26  ;;  %v640_v44 = vmul.f32 0.5, %v639_v33  ;;  %v664_v20 = vmul.f32 %v1057_v40, %v578_v11  ;;  %vm695_vm11 = vcmask 261120  }
 0x239   : > { %v609_v38 = vsub.f32 1.5, %v608_v28  ;;  %v618_v55 = vmul.f32 0.5, %v617_v39  ;;  %vm817_vm15 = vcmask 130048  }
 0x23a   : > { %v596_v50 = vmul.f32 %v1073_v0, %v595_v36  ;;  %v641_v0 = vsub.f32 1.5, %v640_v44  ;;  %v727_v36 = vld [vmem:[%s1553_s7] sm:$0xff] }
 0x23b   : > { %v610_v54 = vmul.f32 %v1390_v2, %v609_v38  ;;  %v619_v3 = vsub.f32 1.5, %v618_v55  ;;  %v1062_v44 = vld [vmem:[%s1554_s8] ss:$0 sm:$0xff] }
 0x23c   : > { %v597_v1 = vmul.f32 %v596_v50, %v1363_v51  ;;  %v642_v8 = vmul.f32 %v1404_v12, %v641_v0 }
 0x23d   : > { %v614_v47 = vsel %vm613_vm0, %v1390_v2, %v610_v54  ;;  %v620_v13 = vmul.f32 %v1407_v17, %v619_v3 }
 0x23e   : > { %v647_v59 = vmul.f32 %v636_v62, %v614_v47  ;;  %v599_v2 = vsel %vm598_vm2, %v1363_v51, %v597_v1  ;;  %v646_v19 = vsel %vm645_vm8, %v1404_v12, %v642_v8  ;;  %v660_v51 = vadd.f32 %v656_v18, %v1333_v25  ;;  %v729_v25 = vld [vmem:[%s1553_s7 + $0x10] sm:$0xff] }
 0x23f   : > { %v602_v16 = vsel %vm600_vm7, %v601_v9, %v599_v2  ;;  %v624_v56 = vsel %vm623_vm10, %v1407_v17, %v620_v13  ;;  %754 = vmatpush.msra.mxu3 %v729_v25  ;;  %v728_v17 = vld [vmem:[%s1553_s7 + $0x8] sm:$0xff] }
 0x240   : > { %v670_v24 = vmul.f32 %v1058_v58, %v602_v16  ;;  %v648_v26 = vmul.f32 %v646_v19, %v624_v56  ;;  %v666_v30 = vadd.f32 %v664_v20, %v660_v51  ;;  %v834_v9 = vld [vmem:[%s1318_s15] sm:$0xff] }
 0x241   : > { %755 = vmatpush.msra.mxu3 %v728_v17 }
 0x242   : > { %v672_v33 = vadd.f32 %v670_v24, %v666_v30 }
 0x243   : > { %756 = vmatpush.msra.mxu3 %v727_v36 }
 0x265   : > { %v551_v7 = vpop.xlane.xlu1 %550 }
 0x266   : > { %v649_v10 = vmul.f32 %v647_v59, %v551_v7 }
 0x268   : > { %v675_v15 = vmul.f32 %v1059_v52, %v649_v10 }
 0x26a   : > { %v677_v22 = vadd.f32 %v675_v15, %v671_v14 }
 0x26c   : > { %v683_v28 = vadd.f32 %v1060_v46, %v677_v22 }
 0x26d   : > { %v554_v29 = vpop.xlane.xlu1 %553 }
 0x26e   : > { %v650_v31 = vmul.f32 %v648_v26, %v554_v29  ;;  %v685_v32 = vmax.f32 %v683_v28, 0.0 }
 0x270   : > { %v676_v34 = vmul.f32 %v1059_v52, %v650_v31  ;;  %958 = vmatmul.msk.f32.vlgmr.msra.gmra.mxu2 %vm695_vm11, %v685_v32 }
 0x272   : > { %v678_v63 = vadd.f32 %v676_v34, %v672_v33 }
 0x274   : > { %v684_v12 = vadd.f32 %v1060_v46, %v678_v63 }
 0x276   : > { %v686_v35 = vmax.f32 %v684_v12, 0.0 }
 0x278   : > { %959 = vmatmul.msk.f32.gmra.mxu2 %vm695_vm11, %v686_v35 }
 0x296   : > { %v809_v2 = vpop.trf.xlu2 }
 0x2f3   : > { %v719_v38 = vpop.f32.mrf.mxu2 }
 0x2f4   : > { %v720_v39 = vadd.f32 %v1061_v37, %v719_v38 }
 0x2f6   : > { %v725_v40 = vmax.f32 %v720_v39, 0.0 }
 0x2f8   : > { %960 = vmatmul.msk.f32.vlgmr.msra.gmra.mxu3 %vm695_vm11, %v725_v40 }
 0x2fb   : > { %v722_v41 = vpop.f32.mrf.mxu2 }
 0x2fc   : > { %v723_v42 = vadd.f32 %v1061_v37, %v722_v41 }
 0x2fe   : > { %v726_v43 = vmax.f32 %v723_v42, 0.0 }
 0x300   : > { %961 = vmatmul.msk.f32.gmra.mxu3 %vm695_vm11, %v726_v43 }
 0x37b   : > { %v758_v48 = vpop.f32.mrf.mxu3 }
 0x37c   : > { %v759_v50 = vadd.f32 %v1062_v44, %v758_v48 }
 0x37e   : > { %v764_v53 = vmax.f32 %v759_v50, 0.0 }
 0x380   : > { %v770_v54 = vmul.f32 %v1063_v45, %v764_v53 }
 0x382   : > { %v772_v55 = vsel %vm695_vm11, %v770_v54, 0.0 }
 0x383   : > { %773 = vadd.xlane.f32.xlu1 %v772_v55  ;;  %v761_v57 = vpop.f32.mrf.mxu3 }
 0x384   : > { %v762_v58 = vadd.f32 %v1062_v44, %v761_v57 }
 0x386   : > { %v765_v60 = vmax.f32 %v762_v58, 0.0 }
 0x388   : > { %v771_v61 = vmul.f32 %v1063_v45, %v765_v60 }
 0x38a   : > { %v775_v62 = vsel %vm695_vm11, %v771_v61, 0.0 }
 0x38b   : > { %776 = vadd.xlane.f32.xlu0 %v775_v62 }
 0x3f6   : > { %v774_v0 = vpop.xlane.xlu1 %773 }
 0x3f7   : > { %v778_v49 = vmul.f32 %v774_v0, %v1328_v23 }
 0x3f9   : > { %v962_v3 = vclamps-f32 %v778_v49, 100.0 }
 0x3fe   : > { %v777_v1 = vpop.xlane.xlu0 %776 }
 0x3ff   : > { %v779_v47 = vmul.f32 %v777_v1, %v1336_v27 }
 0x401   : > { %v963_v4 = vclamps-f32 %v779_v47, 100.0 }
 0x403   : > { %v1052_v5 = vpack.i.bf16 %v963_v4, %v962_v3 }
 0x405   : > { %1053 = vrot.lane.b32.xlu1 %v1052_v5, %s1182_s29  ;;  %s969_s29 = sshll.u32 %s1162_s17, 3 }
 0x406   : > { %s848_s24 = scalar_lea.hbm %s1556_s10, %s969_s29 }
 0x407   : > { %s852_s12 = sshll.u32 %s848_s24, 4  ;;  %s853_s12 = int_to_ptr.hbm [resolvable:$true] %s852_s12 }
 0x408   : > { %s1094_s22 = sshra.s32 %s853_s12, 4  ;;  %s1095_s22 = int_to_ptr.hbm [resolvable:$true] %s1094_s22 }
 0x409   : > { %s1096_s27 = scalar_lea.hbm %s1095_s22, 8  ;;  %p1101_p4 = scmp.lt.s32.totalorder %s1095_s22, %s1556_s10 }
 0x40a   : > { %p1097_p0 = scmp.ne.s32.totalorder %s1095_s22, %s1096_s27  ;;  %p1102_p5 = scmp.lt.s32.totalorder %s1100_s18, %s1096_s27 }
 0x40c   : > { %p1098_p1 = pnand %p1097_p0, %p1287_p3  ;;  %p1103_p6 = por %p1102_p5, %p1101_p4 }
 0x40e   : > { %p1099_p2 = pneg %p1098_p1 }
 0x410   : > { %p1104_p7 = pnand %p1103_p6, %p1099_p2 }
 0x477   : > { %v1054_v6 = vpop.permute.xlu1 %1053 }
 0x478   : > { %v1056_v52 = vunpack.i.h.bf16 %v1054_v6  ;;  %v1055_v59 = vunpack.i.l.bf16 %v1054_v6 }
 0x47a   : > { %v793_v21 = vsel %vm695_vm11, %v726_v43, %v1056_v52  ;;  %v792_v23 = vsel %vm695_vm11, %v725_v40, %v1055_v59 }
 0x47b   : > { %v795_v7 = vsel %vm794_vm12, %v792_v23, 1.0  ;;  %v796_v8 = vsel %vm794_vm12, %v793_v21, 1.0 }
 0x47c   : > { %v965_v27 = vpack.c.bf16 %v796_v8, %v795_v7 }
 0x47e   : > { %966 = vmatpush.bf16.msk.msrb.mxu0 %vm964_vm14, %v965_v27 }
 0x481   : > { %967 = vmatmul.msk.bf16.vlgmr.msrb.gmra.mxu0 %vm817_vm15, %v809_v2 }
 0x4fe   : > { %v830_v10 = vpop.f32.mrf.mxu0 }
 0x4ff   : > { %v835_v11 = vadd.f32 %v834_v9, %v830_v10 }
 0x501   : > { %836 = vst [vmem:[%s1318_s15] sm:$0xff] %v835_v11 }
 0x502   : > { %1107 = shalt.err (!%p1104_p7)
}
 0x503   : > { %972 = dma.vmem_to_hbm [thread:$0]  (%p1287_p3), %s851_s11, 128, %s853_s12, %s838_s21  }
 0x506   : > { %v832_v13 = vpop.f32.mrf.mxu0 }
 0x507 PF: > { %p978_p8 = scmp.ge.s32.totalorder %s1174_s20, 2  ;;  %s864_s15 = sand.u32 1, %s1146_s13  }
 0x508   : > { %s865_s30 = scalar_lea.sflag [#allocation3], %s864_s15 }
 0x509   : > { %p975_p10 = pnand %p978_p8, %p1297_p9 }
 0x50b   : > { %p976_p11 = pneg %p975_p10 }
 0x50d   : > { %1141 = dma.done.wait (%p976_p11), %s865_s30, 128  }
 0x50e   : > { %1143 = vsyncadd (%p976_p11), %s865_s30, 4294967168  ;;  %s23_s20 = sadd.s32 1, %s1174_s20   ;;  %s1569_s16 = sld [smem:[#allocation5_spill]] }
 0x50f   : > { %p20_p12 = scmp.ge.s32.totalorder %s23_s20, 6   ;;  %s1570_s15 = sld [smem:[#allocation10_spill]] }
 0x510   : > { %s1571_s25 = sld [smem:[#allocation6_spill]]  ;;  %s1575_s13 = smov %s1150_s14 }
 0x511   : > { %s1572_s17 = sld [smem:[#allocation7_spill]] }
 0x512   : > { %s1573_s18 = sld [smem:[#allocation8_spill]]  ;;  %22 = sbr.rel (!%p20_p12) target bundleno = 5 (0x5), region = 102 }
 0x513   : > { %s1574_s19 = sld [smem:[#allocation9_spill]] }
 0x514   : > { %s1576_s14 = smov %s1569_s16 }
 0x516   : > { %s1577_s16 = smov %s1571_s25 }
 0x517   :  { %871 = vsyncpa [#allocation3], 1 }
 0x518   :  { %873 = vsyncpa [#allocation3 + $0x1], 1 }

</bundles_post_ra>
